<compile_context>
chip_gen: v7x
topology: tpu7x:2x2x1
jax: 0.10.0
libtpu: 0.0.40
codegen_flags: <defaults>
</compile_context>

<pallas_src>
import functools

import jax
import jax.numpy as jnp
from jax.experimental import pallas as pl
from jax.experimental.pallas import tpu as pltpu

# The 8 neighbor offsets (row, col) of the 3x3 window, center = (1, 1),
# in the same order as kernel_filter_list in the PyTorch code.
_OFFSETS = (
    (0, 0), (0, 1), (0, 2),
    (1, 0),         (1, 2),
    (2, 0), (2, 1), (2, 2),
)


def _contrast_depth_loss_kernel(out_ref, lab_ref, loss_ref, *, denom):
    step = pl.program_id(0)

    @pl.when(step == 0)
    def _init():
        loss_ref[...] = jnp.zeros_like(loss_ref)

    H, W = out_ref.shape[1], out_ref.shape[2]

    # Upcast in-kernel (inputs may be bf16); d = out - label is computed once,
    # and per offset (o_shift - o_center) - (l_shift - l_center)
    # == d_shift - d_center exactly.
    d = out_ref[...].astype(jnp.float32) - lab_ref[...].astype(jnp.float32)
    d_center = d[:, 1:H - 1, 1:W - 1]          # (Bt, H-2, W-2)

    acc2d = None
    for (a, c) in _OFFSETS:
        diff = d[:, a:a + H - 2, c:c + W - 2] - d_center
        sq = diff * diff
        acc2d = sq if acc2d is None else acc2d + sq

    # Single cross-lane/cross-sublane reduction per grid step.
    partial = jnp.sum(acc2d)
    loss_ref[...] = loss_ref[...] + jnp.reshape(partial, (1, 1))

    @pl.when(step == pl.num_programs(0) - 1)
    def _finalize():
        loss_ref[...] = loss_ref[...] * jnp.float32(1.0 / denom)


def contrast_depth_loss(out, label):
    """Pallas implementation of Contrast_depth_loss.forward(out, label)."""
    assert out.shape == label.shape, (out.shape, label.shape)
    B, H, W = out.shape
    assert B >= 1 and H >= 3 and W >= 3, (B, H, W)
    denom = float(B * 8 * (H - 2) * (W - 2))

    # ---- choose batch tile Bt against a conservative VMEM budget ----------
    # pipeline: 2 inputs x 2 buffers x itemsize; in-kernel f32 temporaries
    # (d, center, diff, acc2d, ...) ~ 28 B / element.
    itemsize = jnp.dtype(out.dtype).itemsize
    bytes_per_elem = 4 * itemsize + 28
    vmem_budget = 24 * 1024 * 1024
    bt = max(1, min(B, vmem_budget // (H * W * bytes_per_elem)))
    num_tiles = (B + bt - 1) // bt
    padded_b = num_tiles * bt

    if padded_b != B:
        # Zero padding contributes exactly 0 to the sum of squared diffs
        # (d == 0 everywhere on padded images); denom stays the original B.
        pad = padded_b - B
        out = jnp.pad(out, ((0, pad), (0, 0), (0, 0)))
        label = jnp.pad(label, ((0, pad), (0, 0), (0, 0)))

    loss = pl.pallas_call(
        functools.partial(_contrast_depth_loss_kernel, denom=denom),
        out_shape=jax.ShapeDtypeStruct((1, 1), jnp.float32),
        grid_spec=pltpu.PrefetchScalarGridSpec(
            num_scalar_prefetch=0,
            grid=(num_tiles,),
            in_specs=[
                pl.BlockSpec((bt, H, W), lambda b: (b, 0, 0)),
                pl.BlockSpec((bt, H, W), lambda b: (b, 0, 0)),
            ],
            out_specs=pl.BlockSpec((1, 1), lambda b: (0, 0)),
        ),
        compiler_params=pltpu.CompilerParams(
            dimension_semantics=("arbitrary",),   # accumulation across tiles
            vmem_limit_bytes=32 * 1024 * 1024,    # safe on v5e/v6e/v7x
        ),
    )(out, label)
    return loss[0, 0]


def _reference_contrast_depth_loss(out, label):
    """Pure-JAX reference mirroring the PyTorch code (for verification)."""
    def cdc(x):
        B, H, W = x.shape
        center = x[:, 1:H - 1, 1:W - 1]
        chans = [x[:, a:a + H - 2, c:c + W - 2] - center for (a, c) in _OFFSETS]
        return jnp.stack(chans, axis=1)  # (B, 8, H-2, W-2)

    co = cdc(out.astype(jnp.float32))
    cl = cdc(label.astype(jnp.float32))
    return jnp.mean((co - cl) ** 2)


if __name__ == "__main__":
    key = jax.random.PRNGKey(0)
    k1, k2 = jax.random.split(key)
    B, H, W = 2, 32, 32  # module docstring: 32x32 depth maps
    out = jax.random.uniform(k1, (B, H, W), dtype=jnp.float32)
    label = jax.random.uniform(k2, (B, H, W), dtype=jnp.float32)

    loss = contrast_depth_loss(out, label)
    loss = jax.block_until_ready(loss)

    ref = jax.block_until_ready(_reference_contrast_depth_loss(out, label))
    assert jnp.allclose(loss, ref, rtol=1e-5, atol=1e-6), (loss, ref)

    print("KERNEL_OK")
</pallas_src>

<mosaic_0001>
module attributes {stable_mosaic.version = 11 : i64} {
  func.func @_contrast_depth_loss_kernel(%arg0: i32, %arg1: memref<2x32x32xf32, #tpu.memory_space<vmem>>, %arg2: memref<2x32x32xf32, #tpu.memory_space<vmem>>, %arg3: memref<1x1xf32, #tpu.memory_space<vmem>>) attributes {dimension_semantics = [#tpu.dimension_semantics<arbitrary>], iteration_bounds = array<i64: 1>, scalar_prefetch = 0 : i64, scratch_operands = 0 : i64, tpu.core_type = #tpu.core_type<tc>, window_params = [{transform_indices = @transform_0, window_bounds = array<i64: 2, 32, 32>}, {transform_indices = @transform_1, window_bounds = array<i64: 2, 32, 32>}, {pipeline_mode = #tpu.pipeline_mode<synchronous>, transform_indices = @transform_2, window_bounds = array<i64: 1, 1>}]} {
    %c0_i32 = arith.constant 0 : i32
    %0 = arith.cmpi eq, %arg0, %c0_i32 : i32
    %1 = arith.extui %0 : i1 to i32
    %c0_i32_0 = arith.constant 0 : i32
    %2 = arith.cmpi ne, %1, %c0_i32_0 : i32
    scf.if %2 {
      %cst_12 = arith.constant 0.000000e+00 : f32
      %49 = vector.broadcast %cst_12 : f32 to vector<1x1xf32>
      %c0_13 = arith.constant 0 : index
      %c0_14 = arith.constant 0 : index
      %50 = vector.load %arg3[%c0_13, %c0_14] : memref<1x1xf32, #tpu.memory_space<vmem>>, vector<1x1xf32>
      tpu.vector_store %arg3[%c0_13, %c0_14], %49 {strides = array<i32>} : memref<1x1xf32, #tpu.memory_space<vmem>>, vector<1x1xf32>,
    } else {
    }
    %c0 = arith.constant 0 : index
    %c0_1 = arith.constant 0 : index
    %c0_2 = arith.constant 0 : index
    %3 = vector.load %arg1[%c0, %c0_1, %c0_2] : memref<2x32x32xf32, #tpu.memory_space<vmem>>, vector<2x32x32xf32>
    %c0_3 = arith.constant 0 : index
    %c0_4 = arith.constant 0 : index
    %c0_5 = arith.constant 0 : index
    %4 = vector.load %arg2[%c0_3, %c0_4, %c0_5] : memref<2x32x32xf32, #tpu.memory_space<vmem>>, vector<2x32x32xf32>
    %5 = arith.subf %3, %4 : vector<2x32x32xf32>
    %6 = vector.extract_strided_slice %5 {offsets = [0, 1, 1], sizes = [2, 30, 30], strides = [1, 1, 1]} : vector<2x32x32xf32> to vector<2x30x30xf32>
    %7 = vector.extract_strided_slice %5 {offsets = [0, 0, 0], sizes = [2, 30, 30], strides = [1, 1, 1]} : vector<2x32x32xf32> to vector<2x30x30xf32>
    %8 = arith.subf %7, %6 : vector<2x30x30xf32>
    %9 = arith.mulf %8, %8 : vector<2x30x30xf32>
    %10 = vector.extract_strided_slice %5 {offsets = [0, 0, 1], sizes = [2, 30, 30], strides = [1, 1, 1]} : vector<2x32x32xf32> to vector<2x30x30xf32>
    %11 = arith.subf %10, %6 : vector<2x30x30xf32>
    %12 = arith.mulf %11, %11 : vector<2x30x30xf32>
    %13 = arith.addf %9, %12 : vector<2x30x30xf32>
    %14 = vector.extract_strided_slice %5 {offsets = [0, 0, 2], sizes = [2, 30, 30], strides = [1, 1, 1]} : vector<2x32x32xf32> to vector<2x30x30xf32>
    %15 = arith.subf %14, %6 : vector<2x30x30xf32>
    %16 = arith.mulf %15, %15 : vector<2x30x30xf32>
    %17 = arith.addf %13, %16 : vector<2x30x30xf32>
    %18 = vector.extract_strided_slice %5 {offsets = [0, 1, 0], sizes = [2, 30, 30], strides = [1, 1, 1]} : vector<2x32x32xf32> to vector<2x30x30xf32>
    %19 = arith.subf %18, %6 : vector<2x30x30xf32>
    %20 = arith.mulf %19, %19 : vector<2x30x30xf32>
    %21 = arith.addf %17, %20 : vector<2x30x30xf32>
    %22 = vector.extract_strided_slice %5 {offsets = [0, 1, 2], sizes = [2, 30, 30], strides = [1, 1, 1]} : vector<2x32x32xf32> to vector<2x30x30xf32>
    %23 = arith.subf %22, %6 : vector<2x30x30xf32>
    %24 = arith.mulf %23, %23 : vector<2x30x30xf32>
    %25 = arith.addf %21, %24 : vector<2x30x30xf32>
    %26 = vector.extract_strided_slice %5 {offsets = [0, 2, 0], sizes = [2, 30, 30], strides = [1, 1, 1]} : vector<2x32x32xf32> to vector<2x30x30xf32>
    %27 = arith.subf %26, %6 : vector<2x30x30xf32>
    %28 = arith.mulf %27, %27 : vector<2x30x30xf32>
    %29 = arith.addf %25, %28 : vector<2x30x30xf32>
    %30 = vector.extract_strided_slice %5 {offsets = [0, 2, 1], sizes = [2, 30, 30], strides = [1, 1, 1]} : vector<2x32x32xf32> to vector<2x30x30xf32>
    %31 = arith.subf %30, %6 : vector<2x30x30xf32>
    %32 = arith.mulf %31, %31 : vector<2x30x30xf32>
    %33 = arith.addf %29, %32 : vector<2x30x30xf32>
    %34 = vector.extract_strided_slice %5 {offsets = [0, 2, 2], sizes = [2, 30, 30], strides = [1, 1, 1]} : vector<2x32x32xf32> to vector<2x30x30xf32>
    %35 = arith.subf %34, %6 : vector<2x30x30xf32>
    %36 = arith.mulf %35, %35 : vector<2x30x30xf32>
    %37 = arith.addf %33, %36 : vector<2x30x30xf32>
    %38 = vector.shape_cast %37 : vector<2x30x30xf32> to vector<1x2x30x30xf32>
    %cst = arith.constant dense<0.000000e+00> : vector<1xf32>
    %39 = vector.multi_reduction <add>, %38, %cst [1, 2, 3] : vector<1x2x30x30xf32> to vector<1xf32>
    %40 = vector.shape_cast %39 : vector<1xf32> to vector<1x1x1x1xf32>
    %41 = vector.extract %40[0, 0, 0, 0] : f32 from vector<1x1x1x1xf32>
    %c0_6 = arith.constant 0 : index
    %c0_7 = arith.constant 0 : index
    %42 = vector.load %arg3[%c0_6, %c0_7] : memref<1x1xf32, #tpu.memory_space<vmem>>, vector<1x1xf32>
    %43 = vector.broadcast %41 : f32 to vector<1x1xf32>
    %44 = arith.addf %42, %43 : vector<1x1xf32>
    %c0_8 = arith.constant 0 : index
    %c0_9 = arith.constant 0 : index
    %45 = vector.load %arg3[%c0_8, %c0_9] : memref<1x1xf32, #tpu.memory_space<vmem>>, vector<1x1xf32>
    tpu.vector_store %arg3[%c0_8, %c0_9], %44 {strides = array<i32>} : memref<1x1xf32, #tpu.memory_space<vmem>>, vector<1x1xf32>,
    %c0_i32_10 = arith.constant 0 : i32
    %46 = arith.cmpi eq, %arg0, %c0_i32_10 : i32
    %47 = arith.extui %46 : i1 to i32
    %c0_i32_11 = arith.constant 0 : i32
    %48 = arith.cmpi ne, %47, %c0_i32_11 : i32
    scf.if %48 {
      %c0_12 = arith.constant 0 : index
      %c0_13 = arith.constant 0 : index
      %49 = vector.load %arg3[%c0_12, %c0_13] : memref<1x1xf32, #tpu.memory_space<vmem>>, vector<1x1xf32>
      %cst_14 = arith.constant 6.94444461E-5 : f32
      %50 = vector.broadcast %cst_14 : f32 to vector<1x1xf32>
      %51 = arith.mulf %49, %50 : vector<1x1xf32>
      %c0_15 = arith.constant 0 : index
      %c0_16 = arith.constant 0 : index
      %52 = vector.load %arg3[%c0_15, %c0_16] : memref<1x1xf32, #tpu.memory_space<vmem>>, vector<1x1xf32>
      tpu.vector_store %arg3[%c0_15, %c0_16], %51 {strides = array<i32>} : memref<1x1xf32, #tpu.memory_space<vmem>>, vector<1x1xf32>,
    } else {
    }
    return
  }
  func.func @transform_0(%arg0: i32) -> (i32, i32, i32) {
    %c0_i32 = arith.constant 0 : i32
    %c0_i32_0 = arith.constant 0 : i32
    %c0_i32_1 = arith.constant 0 : i32
    return %arg0, %c0_i32, %c0_i32_0 : i32, i32, i32
  }
  func.func @transform_1(%arg0: i32) -> (i32, i32, i32) {
    %c0_i32 = arith.constant 0 : i32
    %c0_i32_0 = arith.constant 0 : i32
    %c0_i32_1 = arith.constant 0 : i32
    return %arg0, %c0_i32, %c0_i32_0 : i32, i32, i32
  }
  func.func @transform_2(%arg0: i32) -> (i32, i32) {
    %c0_i32 = arith.constant 0 : i32
    %c0_i32_0 = arith.constant 0 : i32
    %c0_i32_1 = arith.constant 0 : i32
    return %c0_i32, %c0_i32_0 : i32, i32
  }
}

</mosaic_0001>

<bundles_post_ra>
// kernel: tpu_custom_call.1
= control target key start
LH: loop header
LB: loop body
LE: loop exit
PB: predicated region body
PF: predicated region fallthrough
CT: control target
= control target key end

     0   :  { %7 = vsyncpa [#allocation3], 0  ;;  %s1313_s0 = inlined_call_operand.hbm [shape: f32[2,32,32], index: 0, kind: input, shape index: {}]   ;;  %s1314_s1 = inlined_call_operand.hbm [shape: f32[2,32,32], index: 1, kind: input, shape index: {}]   ;;  %s1315_s2 = inlined_call_operand.hbm [shape: f32[1,1], index: 2, kind: output, shape index: {}]  }
   0x1   :  { %8 = vsyncpa [#allocation6], 0 }
   0x2   :  { %9 = vsyncpa [#allocation4], 0  ;;  %s851_s9 = smov [#allocation2]   ;;  %s779_s13 = scalar_lea.hbm %s1313_s0, 1024 }
   0x3   :  { %s15_s10 = sshll.u32 %s851_s9, 4  ;;  %p780_p0 = scmp.ne.s32.totalorder %s1313_s0, %s779_s13  ;;  %s16_s10 = int_to_ptr.vmem [resolvable:$true] %s15_s10 }
   0x4   :  { %p783_p1 = scmp.lt.u32.totalorder %s779_s13, %s1313_s0 }
   0x6   :  { %p785_p2 = pnand %p783_p1, %p780_p0 }
   0x8   :  { %788 = shalt.err (!%p785_p2)
}
   0x9   :  { %s789_s18 = scalar_lea.vmem %s16_s10, 1024  ;;  %p794_p4 = scmp.lt.s32.totalorder %s16_s10, %s16_s10 }
   0xa   :  { %p790_p3 = scmp.ne.s32.totalorder %s16_s10, %s789_s18  ;;  %p795_p5 = scmp.lt.s32.totalorder %s789_s18, %s789_s18 }
   0xc   :  { %p796_p6 = por %p795_p5, %p794_p4 }
   0xe   :  { %p797_p7 = pnand %p796_p6, %p790_p3 }
  0x10   :  { %800 = shalt.err (!%p797_p7)
}
  0x11   :  { %s852_s19 = smov 128   ;;  %s853_s20 = smov 8  }
  0x12   :  { %21 = dma.hbm_to_vmem [thread:$0]  %s1313_s0, 1024, %s16_s10, [#allocation3], %s852_s19, %s852_s19, %s853_s20  }
  0x13   :  { %s854_s23 = smov [#allocation5]   ;;  %s801_s27 = scalar_lea.hbm %s1314_s1, 1024 }
  0x14   :  { %s27_s24 = sshll.u32 %s854_s23, 4  ;;  %p802_p8 = scmp.ne.s32.totalorder %s1314_s1, %s801_s27  ;;  %s28_s24 = int_to_ptr.vmem [resolvable:$true] %s27_s24 }
  0x15   :  { %p805_p9 = scmp.lt.u32.totalorder %s801_s27, %s1314_s1 }
  0x17   :  { %p807_p10 = pnand %p805_p9, %p802_p8 }
  0x19   :  { %810 = shalt.err (!%p807_p10)
}
  0x1a   :  { %s811_s4 = scalar_lea.vmem %s28_s24, 1024  ;;  %p816_p12 = scmp.lt.s32.totalorder %s28_s24, %s28_s24 }
  0x1b   :  { %p812_p11 = scmp.ne.s32.totalorder %s28_s24, %s811_s4  ;;  %p817_p13 = scmp.lt.s32.totalorder %s811_s4, %s811_s4 }
  0x1d   :  { %p818_p0 = por %p817_p13, %p816_p12 }
  0x1f   :  { %p819_p1 = pnand %p818_p0, %p812_p11 }
  0x21   :  { %822 = shalt.err (!%p819_p1)
}
  0x22   :  { %33 = dma.hbm_to_vmem [thread:$0]  %s1314_s1, 1024, %s28_s24, [#allocation6], %s852_s19, %s852_s19, %s853_s20  }
  0x23   :  { %845 = dma.done.wait [#allocation3], 1024  }
  0x24   :  { %846 = vsyncadd [#allocation3], 4294966272 }
  0x25   :  { %847 = dma.done.wait [#allocation6], 1024  }
  0x26   :  { %848 = vsyncadd [#allocation6], 4294966272  ;;  %v48_v0 = vld [vmem:[#allocation2 + $0x10] sm:$0xff]  ;;  %v46_v2 = vld [vmem:[#allocation2] sm:$0xff]  ;;  %s855_s6 = smov 1   ;;  %vm78_vm0 = vcmask 1046528  }
  0x27   :  { %v56_v1 = vld [vmem:[#allocation5 + $0x10] sm:$0xff]  ;;  %v54_v4 = vld [vmem:[#allocation5] sm:$0xff]  ;;  %v49_v5 = vld [vmem:[#allocation2 + $0x18] sm:$0xff]  ;;  %vm449_vm1 = vcmask 1040384   ;;  %vm512_vm2 = vcmask 1045504   ;;  %s856_s1 = smov 127  }
  0x28   :  { %v899_v3 = vsub.f32 %v48_v0, %v56_v1  ;;  %v57_v6 = vld [vmem:[#allocation5 + $0x18] sm:$0xff]  ;;  %v901_v7 = vsub.f32 %v46_v2, %v54_v4  ;;  %v47_v8 = vld [vmem:[#allocation2 + $0x8] sm:$0xff]  ;;  %v50_v13 = vld [vmem:[#allocation2 + $0x20] sm:$0xff]  ;;  %s857_s7 = smov 126   ;;  %vm715_vm3 = vcmask 244736   ;;  %vm721_vm4 = vcmask 242688  }
  0x29   :  { %v55_v9 = vld [vmem:[#allocation5 + $0x8] sm:$0xff]  ;;  %v905_v10 = vsub.f32 %v49_v5, %v57_v6  ;;  %v58_v15 = vld [vmem:[#allocation5 + $0x20] sm:$0xff]  ;;  %v52_v33 = vld [vmem:[#allocation2 + $0x30] sm:$0xff]  ;;  %vm44_vm5 = vcmask 0   ;;  %s859_s9 = smov [#allocation7]  }
  0x2a   :  { %359 = vrot.lane.b32.xlu0 %v899_v3, %s855_s6  ;;  %v907_v11 = vsub.f32 %v47_v8, %v55_v9  ;;  %355 = vrot.lane.b32.xlu1 %v901_v7, %s855_s6  ;;  %v79_v12 = vrot.slane %v901_v7, 1  ;;  %v51_v16 = vld [vmem:[#allocation2 + $0x28] sm:$0xff]  ;;  %v82_v19 = vrot.slane %v899_v3, 1  ;;  %v924_v21 = vsub.f32 %v50_v13, %v58_v15  ;;  %v60_v34 = vld [vmem:[#allocation5 + $0x30] sm:$0xff]  ;;  %v53_v40 = vld [vmem:[#allocation2 + $0x38] sm:$0xff]  ;;  %s758_s10 = sshll.u32 %s859_s9, 4  ;;  %s759_s10 = int_to_ptr.vmem [resolvable:$true] %s758_s10 }
  0x2b   :  { %v59_v17 = vld [vmem:[#allocation5 + $0x28] sm:$0xff]  ;;  %v916_v18 = vrot.slane %v905_v10, 1  ;;  %v930_v24 = vrot.slane %v901_v7, 7  ;;  %v963_v36 = vsub.f32 %v52_v33, %v60_v34  ;;  %v453_v37 = vrot.slane %v899_v3, 7  ;;  %v61_v41 = vld [vmem:[#allocation5 + $0x38] sm:$0xff]  ;;  %s823_s11 = scalar_lea.vmem %s759_s10, 16  ;;  %p828_p3 = scmp.lt.s32.totalorder %s759_s10, %s759_s10 }
  0x2c   :  { %v80_v14 = vrot.slane %v907_v11, 1  ;;  %v926_v22 = vsub.f32 %v51_v16, %v59_v17  ;;  %v451_v23 = vrot.slane %v907_v11, 7  ;;  %v86_v26 = vrot.slane %v924_v21, 1  ;;  %p824_p2 = scmp.ne.s32.totalorder %s759_s10, %s823_s11  ;;  %s827_s12 = scalar_lea.vmem %s759_s10, 32 }
  0x2d   :  { %v945_v29 = vsel %vm78_vm0, %v82_v19, %v916_v18  ;;  %v551_v35 = vsub.f32 %v901_v7, %v930_v24  ;;  %v89_v43 = vrot.slane %v963_v36, 1  ;;  %v975_v45 = vsub.f32 %v53_v40, %v61_v41  ;;  %p829_p4 = scmp.lt.s32.totalorder %s827_s12, %s823_s11 }
  0x2e   :  { %361 = vrot.lane.b32.xlu0 %v905_v10, %s855_s6  ;;  %357 = vrot.lane.b32.xlu1 %v907_v11, %s855_s6  ;;  %v922_v20 = vsel %vm78_vm0, %v79_v12, %v80_v14  ;;  %v83_v25 = vsel %vm78_vm0, %v80_v14, %v82_v19  ;;  %v87_v27 = vrot.slane %v926_v22, 1  ;;  %v941_v28 = vsel %vm449_vm1, %v930_v24, %v451_v23 }
  0x2f   :  { %v552_v30 = vsub.f32 %v907_v11, %v941_v28  ;;  %v559_v39 = vmul.f32 %v551_v35, %v551_v35  ;;  %v973_v44 = vsel %vm449_vm1, %v451_v23, %v453_v37  ;;  %v455_v48 = vrot.slane %v905_v10, 7  ;;  %p830_p5 = por %p829_p4, %p828_p3 }
  0x30   :  { %v953_v31 = vsel %vm78_vm0, %v86_v26, %v87_v27  ;;  %v90_v47 = vsel %vm78_vm0, %v87_v27, %v89_v43  ;;  %v989_v49 = vrot.slane %v975_v45, 1  ;;  %v1003_v52 = vrot.slane %v924_v21, 7 }
  0x31   :  { %v955_v32 = vmul.f32 %v552_v30, %v552_v30  ;;  %v575_v42 = vrot.slane %v559_v39, 2  ;;  %v995_v50 = vsel %vm449_vm1, %v453_v37, %v455_v48  ;;  %v458_v53 = vrot.slane %v926_v22, 7  ;;  %p831_p6 = pnand %p830_p5, %p824_p2 }
  0x32   :  { %197 = vrot.lane.b32.xlu0 %v922_v20, %s855_s6  ;;  %203 = vrot.lane.b32.xlu1 %v916_v18, %s855_s6  ;;  %v92_v51 = vsel %vm78_vm0, %v89_v43, %v989_v49  ;;  %v460_v54 = vrot.slane %v963_v36, 7  ;;  %v462_v56 = vrot.slane %v975_v45, 7  ;;  %v141_v59 = vsub.f32 %v901_v7, %v922_v20 }
  0x33   :  { %v576_v38 = vrot.slane %v955_v32, 2  ;;  %v1013_v55 = vsel %vm449_vm1, %v1003_v52, %v458_v53  ;;  %v142_v60 = vsub.f32 %v907_v11, %v83_v25  ;;  %v143_v63 = vsub.f32 %v899_v3, %v945_v29 }
  0x34   :  { %v1021_v57 = vsel %vm449_vm1, %v458_v53, %v460_v54  ;;  %v1024_v58 = vsel %vm449_vm1, %v460_v54, %v462_v56  ;;  %v149_v61 = vmul.f32 %v141_v59, %v141_v59  ;;  %v144_v1 = vsub.f32 %v905_v10, %v916_v18 }
  0x35   :  { %v980_v46 = vsel %vm512_vm2, %v575_v42, %v576_v38  ;;  %v150_v62 = vmul.f32 %v142_v60, %v142_v60  ;;  %v151_v0 = vmul.f32 %v143_v63, %v143_v63  ;;  %v145_v4 = vsub.f32 %v924_v21, %v953_v31 }
  0x36   :  { %199 = vrot.lane.b32.xlu0 %v83_v25, %s855_s6  ;;  %201 = vrot.lane.b32.xlu1 %v945_v29, %s855_s6  ;;  %v152_v2 = vmul.f32 %v144_v1, %v144_v1  ;;  %v146_v6 = vsub.f32 %v926_v22, %v90_v47  ;;  %v553_v8 = vsub.f32 %v899_v3, %v973_v44 }
  0x37   :  { %v153_v5 = vmul.f32 %v145_v4, %v145_v4  ;;  %v147_v9 = vsub.f32 %v963_v36, %v92_v51  ;;  %v148_v16 = vsub.f32 %v975_v45, %v989_v49 }
  0x38   :  { %v154_v12 = vmul.f32 %v146_v6, %v146_v6  ;;  %v1091_v13 = vmul.f32 %v553_v8, %v553_v8 }
  0x39   :  { %v155_v14 = vmul.f32 %v147_v9, %v147_v9 }
  0x3a   :  { %205 = vrot.lane.b32.xlu0 %v953_v31, %s855_s6  ;;  %363 = vrot.lane.b32.xlu1 %v924_v21, %s855_s6  ;;  %v578_v15 = vrot.slane %v1091_v13, 2  ;;  %v557_v13 = vsub.f32 %v963_v36, %v1021_v57 }
  0x3c   :  { %v579_v17 = vsel %vm512_vm2, %v576_v38, %v578_v15 }
  0x3e   :  { %365 = vrot.lane.b32.xlu0 %v926_v22, %s855_s6  ;;  %621 = vrot.lane.b32.xlu1 %v930_v24, %s855_s6 }
  0x42   :  { %623 = vrot.lane.b32.xlu0 %v941_v28, %s855_s6  ;;  %625 = vrot.lane.b32.xlu1 %v973_v44, %s855_s6 }
  0x46   :  { %207 = vrot.lane.b32.xlu0 %v90_v47, %s855_s6  ;;  %367 = vrot.lane.b32.xlu1 %v963_v36, %s855_s6 }
  0x4a   :  { %627 = vrot.lane.b32.xlu0 %v995_v50, %s855_s6  ;;  %209 = vrot.lane.b32.xlu1 %v92_v51, %s855_s6 }
  0x4e   :  { %369 = vrot.lane.b32.xlu0 %v975_v45, %s855_s6  ;;  %211 = vrot.lane.b32.xlu1 %v989_v49, %s855_s6 }
  0x52   :  { %629 = vrot.lane.b32.xlu0 %v1003_v52, %s855_s6  ;;  %631 = vrot.lane.b32.xlu1 %v1013_v55, %s855_s6 }
  0x56   :  { %633 = vrot.lane.b32.xlu0 %v1021_v57, %s855_s6  ;;  %635 = vrot.lane.b32.xlu1 %v1024_v58, %s855_s6 }
  0x5a   :  { %93 = vrot.lane.b32.xlu0 %v922_v20, %s856_s1  ;;  %95 = vrot.lane.b32.xlu1 %v83_v25, %s856_s1 }
  0x5e   :  { %277 = vrot.lane.b32.xlu0 %v901_v7, %s856_s1  ;;  %279 = vrot.lane.b32.xlu1 %v907_v11, %s856_s1 }
  0x62   :  { %281 = vrot.lane.b32.xlu0 %v899_v3, %s856_s1  ;;  %97 = vrot.lane.b32.xlu1 %v945_v29, %s856_s1 }
  0x66   :  { %283 = vrot.lane.b32.xlu0 %v905_v10, %s856_s1  ;;  %99 = vrot.lane.b32.xlu1 %v916_v18, %s856_s1  ;;  %v156_v18 = vmul.f32 %v148_v16, %v148_v16 }
  0x6a   :  { %165 = vrot.lane.b32.xlu0 %v149_v61, %s856_s1  ;;  %167 = vrot.lane.b32.xlu1 %v150_v62, %s856_s1 }
  0x6e   :  { %464 = vrot.lane.b32.xlu0 %v930_v24, %s856_s1  ;;  %466 = vrot.lane.b32.xlu1 %v941_v28, %s856_s1 }
  0x72   :  { %468 = vrot.lane.b32.xlu0 %v973_v44, %s856_s1  ;;  %101 = vrot.lane.b32.xlu1 %v953_v31, %s856_s1 }
  0x76   :  { %169 = vrot.lane.b32.xlu0 %v151_v0, %s856_s1  ;;  %285 = vrot.lane.b32.xlu1 %v924_v21, %s856_s1 }
  0x7a   :  { %287 = vrot.lane.b32.xlu0 %v926_v22, %s856_s1  ;;  %470 = vrot.lane.b32.xlu1 %v995_v50, %s856_s1 }
  0x7e   :  { %103 = vrot.lane.b32.xlu0 %v90_v47, %s856_s1  ;;  %171 = vrot.lane.b32.xlu1 %v152_v2, %s856_s1 }
  0x82   :  { %105 = vrot.lane.b32.xlu0 %v92_v51, %s856_s1  ;;  %289 = vrot.lane.b32.xlu1 %v963_v36, %s856_s1 }
  0x86   :  { %472 = vrot.lane.b32.xlu0 %v1003_v52, %s856_s1  ;;  %173 = vrot.lane.b32.xlu1 %v153_v5, %s856_s1 }
  0x8a   :  { %107 = vrot.lane.b32.xlu0 %v989_v49, %s856_s1  ;;  %291 = vrot.lane.b32.xlu1 %v975_v45, %s856_s1 }
  0x8e   :  { %476 = vrot.lane.b32.xlu0 %v1021_v57, %s856_s1  ;;  %474 = vrot.lane.b32.xlu1 %v1013_v55, %s856_s1  ;;  %v565_v57 = vmul.f32 %v557_v13, %v557_v13 }
  0x92   :  { %589 = vrot.lane.b32.xlu0 %v980_v46, %s856_s1  ;;  %175 = vrot.lane.b32.xlu1 %v154_v12, %s856_s1 }
  0x96   :  { %478 = vrot.lane.b32.xlu0 %v1024_v58, %s856_s1  ;;  %177 = vrot.lane.b32.xlu1 %v155_v14, %s856_s1 }
  0x9a   :  { %591 = vrot.lane.b32.xlu1 %v579_v17, %s856_s1  ;;  %v554_v17 = vsub.f32 %v905_v10, %v995_v50 }
  0x9c   :  { %v360_v19 = vpop.permute.xlu0 %359  ;;  %v356_v20 = vpop.permute.xlu1 %355 }
  0x9d   :  { %v379_v28 = vsub.f32 %v901_v7, %v356_v20  ;;  %v381_v35 = vsub.f32 %v899_v3, %v360_v19 }
  0x9e   :  { %179 = vrot.lane.b32.xlu1 %v156_v18, %s856_s1 }
  0x9f   :  { %v387_v37 = vmul.f32 %v379_v28, %v379_v28  ;;  %v389_v46 = vmul.f32 %v381_v35, %v381_v35  ;;  %v562_v28 = vmul.f32 %v554_v17, %v554_v17 }
  0xa0   :  { %v362_v23 = vpop.permute.xlu0 %361  ;;  %v358_v25 = vpop.permute.xlu1 %357 }
  0xa1   :  { %v382_v24 = vsub.f32 %v905_v10, %v362_v23  ;;  %v380_v26 = vsub.f32 %v907_v11, %v358_v25  ;;  %v403_v47 = vrot.slane %v387_v37, 1  ;;  %v406_v56 = vrot.slane %v389_v46, 1 }
  0xa3   :  { %v390_v27 = vmul.f32 %v382_v24, %v382_v24  ;;  %v388_v33 = vmul.f32 %v380_v26, %v380_v26 }
  0xa4   :  { %v198_v29 = vpop.permute.xlu0 %197  ;;  %v204_v31 = vpop.permute.xlu1 %203 }
  0xa5   :  { %v408_v30 = vrot.slane %v390_v27, 1  ;;  %v221_v32 = vsub.f32 %v901_v7, %v198_v29  ;;  %v224_v34 = vsub.f32 %v905_v10, %v204_v31  ;;  %v404_v43 = vrot.slane %v388_v33, 1 }
  0xa7   :  { %423 = vrot.lane.b32.xlu1 %v408_v30, %s857_s7  ;;  %v232_v38 = vmul.f32 %v224_v34, %v224_v34  ;;  %v229_v40 = vmul.f32 %v221_v32, %v221_v32  ;;  %v405_v54 = vsel %vm78_vm0, %v403_v47, %v404_v43  ;;  %v409_v1 = vsel %vm78_vm0, %v406_v56, %v408_v30 }
  0xa8   :  { %v200_v39 = vpop.permute.xlu0 %199  ;;  %v202_v41 = vpop.permute.xlu1 %201  ;;  %v407_v6 = vsel %vm78_vm0, %v404_v43, %v406_v56  ;;  %v580_v34 = vrot.slane %v562_v28, 2 }
  0xa9   :  { %v222_v42 = vsub.f32 %v907_v11, %v200_v39  ;;  %251 = vrot.lane.b32.xlu0 %v232_v38, %s857_s7  ;;  %v223_v48 = vsub.f32 %v899_v3, %v202_v41 }
  0xaa   :  { %v581_v43 = vsel %vm512_vm2, %v578_v15, %v580_v34  ;;  %v555_v15 = vsub.f32 %v924_v21, %v1003_v52 }
  0xab   :  { %v230_v44 = vmul.f32 %v222_v42, %v222_v42  ;;  %245 = vrot.lane.b32.xlu1 %v229_v40, %s857_s7  ;;  %v231_v59 = vmul.f32 %v223_v48, %v223_v48 }
  0xac   :  { %v206_v49 = vpop.permute.xlu0 %205  ;;  %v364_v51 = vpop.permute.xlu1 %363 }
  0xad   :  { %v383_v53 = vsub.f32 %v924_v21, %v364_v51  ;;  %247 = vrot.lane.b32.xlu0 %v230_v44, %s857_s7  ;;  %v225_v4 = vsub.f32 %v924_v21, %v206_v49 }
  0xaf   :  { %417 = vrot.lane.b32.xlu1 %v405_v54, %s857_s7  ;;  %v391_v61 = vmul.f32 %v383_v53, %v383_v53  ;;  %v233_v20 = vmul.f32 %v225_v4, %v225_v4  ;;  %v556_v54 = vsub.f32 %v926_v22, %v1013_v55  ;;  %v558_v55 = vsub.f32 %v975_v45, %v1024_v58 }
  0xb0   :  { %v366_v60 = vpop.permute.xlu0 %365  ;;  %v622_v62 = vpop.permute.xlu1 %621 }
  0xb1   :  { %v384_v63 = vsub.f32 %v926_v22, %v366_v60  ;;  %v645_v0 = vsub.f32 %v901_v7, %v622_v62  ;;  %249 = vrot.lane.b32.xlu0 %v231_v59, %s857_s7  ;;  %v410_v8 = vrot.slane %v391_v61, 1 }
  0xb3   :  { %v1128_v2 = vmul.f32 %v384_v63, %v384_v63  ;;  %421 = vrot.lane.b32.xlu1 %v409_v1, %s857_s7  ;;  %v653_v9 = vmul.f32 %v645_v0, %v645_v0  ;;  %v564_v0 = vmul.f32 %v556_v54, %v556_v54  ;;  %v563_v1 = vmul.f32 %v555_v15, %v555_v15 }
  0xb4   :  { %v624_v5 = vpop.permute.xlu0 %623  ;;  %v626_v14 = vpop.permute.xlu1 %625 }
  0xb5   :  { %v411_v12 = vrot.slane %v1128_v2, 1  ;;  %v646_v16 = vsub.f32 %v907_v11, %v624_v5  ;;  %419 = vrot.lane.b32.xlu0 %v407_v6, %s857_s7  ;;  %v669_v24 = vrot.slane %v653_v9, 2  ;;  %v647_v31 = vsub.f32 %v899_v3, %v626_v14 }
  0xb6   :  { %v583_v9 = vrot.slane %v564_v0, 2  ;;  %v566_v14 = vmul.f32 %v558_v55, %v558_v55  ;;  %v582_v17 = vrot.slane %v563_v1, 2 }
  0xb7   :  { %v654_v18 = vmul.f32 %v646_v16, %v646_v16  ;;  %v412_v19 = vsel %vm78_vm0, %v410_v8, %v411_v12  ;;  %v655_v38 = vmul.f32 %v647_v31, %v647_v31  ;;  %v585_v16 = vrot.slane %v565_v57, 2 }
  0xb8   :  { %425 = vrot.lane.b32.xlu1 %v412_v19, %s857_s7  ;;  %v208_v23 = vpop.permute.xlu0 %207  ;;  %v368_v26 = vpop.permute.xlu1 %367 }
  0xb9   :  { %v670_v25 = vrot.slane %v654_v18, 2  ;;  %v226_v27 = vsub.f32 %v926_v22, %v208_v23  ;;  %253 = vrot.lane.b32.xlu0 %v233_v20, %s857_s7  ;;  %v385_v39 = vsub.f32 %v963_v36, %v368_v26  ;;  %v672_v47 = vrot.slane %v655_v38, 2 }
  0xba   :  { %v586_v26 = vsel %vm512_vm2, %v583_v9, %v585_v16 }
  0xbb   :  { %v234_v29 = vmul.f32 %v226_v27, %v226_v27  ;;  %v671_v50 = vsel %vm512_vm2, %v669_v24, %v670_v25  ;;  %v393_v48 = vmul.f32 %v385_v39, %v385_v39  ;;  %v673_v63 = vsel %vm512_vm2, %v670_v25, %v672_v47 }
  0xbc   :  { %683 = vrot.lane.b32.xlu1 %v671_v50, %s857_s7  ;;  %v628_v30 = vpop.permute.xlu0 %627  ;;  %v210_v32 = vpop.permute.xlu1 %209  ;;  %v587_v24 = vrot.slane %v566_v14, 2  ;;  %v584_v27 = vsel %vm512_vm2, %v582_v17, %v583_v9 }
  0xbd   :  { %v227_v33 = vsub.f32 %v963_v36, %v210_v32  ;;  %255 = vrot.lane.b32.xlu0 %v234_v29, %s857_s7  ;;  %v648_v49 = vsub.f32 %v905_v10, %v628_v30  ;;  %v413_v59 = vrot.slane %v393_v48, 1 }
  0xbf   :  { %v235_v35 = vmul.f32 %v227_v33, %v227_v33  ;;  %v656_v60 = vmul.f32 %v648_v49, %v648_v49  ;;  %v414_v8 = vsel %vm78_vm0, %v411_v12, %v413_v59 }
  0xc0   :  { %v370_v37 = vpop.permute.xlu0 %369  ;;  %v212_v40 = vpop.permute.xlu1 %211 }
  0xc1   :  { %v386_v41 = vsub.f32 %v975_v45, %v370_v37  ;;  %v228_v42 = vsub.f32 %v975_v45, %v212_v40  ;;  %257 = vrot.lane.b32.xlu0 %v235_v35, %s857_s7  ;;  %v674_v52 = vrot.slane %v656_v60, 2  ;;  %v588_v40 = vsel %vm512_vm2, %v585_v16, %v587_v24 }
  0xc3   :  { %v236_v44 = vmul.f32 %v228_v42, %v228_v42  ;;  %v1157_v51 = vmul.f32 %v386_v41, %v386_v41  ;;  %v675_v2 = vsel %vm512_vm2, %v672_v47, %v674_v52 }
  0xc4   :  { %v630_v46 = vpop.permute.xlu0 %629  ;;  %v632_v53 = vpop.permute.xlu1 %631 }
  0xc5   :  { %259 = vrot.lane.b32.xlu1 %v236_v44, %s857_s7  ;;  %593 = vrot.lane.b32.xlu0 %v581_v43, %s856_s1  ;;  %v415_v61 = vrot.slane %v1157_v51, 1  ;;  %v650_v58 = vsub.f32 %v926_v22, %v632_v53  ;;  %v649_v18 = vsub.f32 %v924_v21, %v630_v46 }
  0xc7   :  { %v416_v6 = vsel %vm78_vm0, %v413_v59, %v415_v61  ;;  %v658_v28 = vmul.f32 %v650_v58, %v650_v58  ;;  %v657_v29 = vmul.f32 %v649_v18, %v649_v18 }
  0xc8   :  { %v634_v56 = vpop.permute.xlu0 %633  ;;  %v636_v62 = vpop.permute.xlu1 %635 }
  0xc9   :  { %595 = vrot.lane.b32.xlu1 %v580_v34, %s856_s1  ;;  %685 = vrot.lane.b32.xlu0 %v673_v63, %s857_s7  ;;  %v651_v31 = vsub.f32 %v963_v36, %v634_v56  ;;  %v677_v41 = vrot.slane %v658_v28, 2  ;;  %v676_v42 = vrot.slane %v657_v29, 2  ;;  %v652_v43 = vsub.f32 %v975_v45, %v636_v62 }
  0xcb   :  { %v659_v47 = vmul.f32 %v651_v31, %v651_v31  ;;  %v660_v56 = vmul.f32 %v652_v43, %v652_v43  ;;  %v678_v0 = vsel %vm512_vm2, %v676_v42, %v677_v41 }
  0xcc   :  { %v94_v4 = vpop.permute.xlu0 %93  ;;  %v96_v5 = vpop.permute.xlu1 %95 }
  0xcd   :  { %429 = vrot.lane.b32.xlu1 %v416_v6, %s857_s7  ;;  %427 = vrot.lane.b32.xlu0 %v414_v8, %s857_s7  ;;  %v117_v32 = vsub.f32 %v901_v7, %v94_v4  ;;  %v118_v37 = vsub.f32 %v907_v11, %v96_v5  ;;  %v679_v60 = vrot.slane %v659_v47, 2  ;;  %v681_v1 = vrot.slane %v660_v56, 2 }
  0xcf   :  { %v125_v48 = vmul.f32 %v117_v32, %v117_v32  ;;  %v126_v54 = vmul.f32 %v118_v37, %v118_v37  ;;  %v680_v6 = vsel %vm512_vm2, %v677_v41, %v679_v60 }
  0xd0   :  { %v278_v19 = vpop.permute.xlu0 %277  ;;  %v280_v20 = vpop.permute.xlu1 %279 }
  0xd1   :  { %v301_v23 = vsub.f32 %v901_v7, %v278_v19  ;;  %v302_v12 = vsub.f32 %v907_v11, %v280_v20  ;;  %689 = vrot.lane.b32.xlu1 %v674_v52, %s857_s7  ;;  %687 = vrot.lane.b32.xlu0 %v675_v2, %s857_s7  ;;  %v682_v20 = vsel %vm512_vm2, %v679_v60, %v681_v1 }
  0xd3   :  { %v309_v25 = vmul.f32 %v301_v23, %v301_v23  ;;  %v310_v50 = vmul.f32 %v302_v12, %v302_v12 }
  0xd4   :  { %v282_v30 = vpop.permute.xlu0 %281  ;;  %v98_v34 = vpop.permute.xlu1 %97 }
  0xd5   :  { %v325_v33 = vrot.slane %v309_v25, 1  ;;  %v303_v35 = vsub.f32 %v899_v3, %v282_v30  ;;  %v326_v38 = vrot.slane %v310_v50, 1  ;;  %599 = vrot.lane.b32.xlu1 %v586_v26, %s856_s1  ;;  %597 = vrot.lane.b32.xlu0 %v584_v27, %s856_s1  ;;  %v119_v52 = vsub.f32 %v899_v3, %v98_v34 }
  0xd7   :  { %v311_v39 = vmul.f32 %v303_v35, %v303_v35  ;;  %v1197_v46 = vsel %vm78_vm0, %v325_v33, %v326_v38  ;;  %v127_v58 = vmul.f32 %v119_v52, %v119_v52 }
  0xd8   :  { %v284_v44 = vpop.permute.xlu0 %283  ;;  %v100_v51 = vpop.permute.xlu1 %99 }
  0xd9   :  { %v328_v49 = vrot.slane %v311_v39, 1  ;;  %v304_v53 = vsub.f32 %v905_v10, %v284_v44  ;;  %601 = vrot.lane.b32.xlu1 %v588_v40, %s856_s1  ;;  %431 = vrot.lane.b32.xlu0 %v415_v61, %s857_s7  ;;  %v120_v29 = vsub.f32 %v905_v10, %v100_v51 }
  0xdb   :  { %v1202_v13 = vmul.f32 %v304_v53, %v304_v53  ;;  %v1205_v15 = vsel %vm78_vm0, %v326_v38, %v328_v49  ;;  %v128_v35 = vmul.f32 %v120_v29, %v120_v29 }
  0xdc   :  { %v166_v59 = vpop.permute.xlu0 %165  ;;  %v168_v63 = vpop.permute.xlu1 %167 }
  0xdd   :  { %v330_v62 = vrot.slane %v1202_v13, 1  ;;  %v1209_v55 = vadd.f32 %v166_v59, %v125_v48  ;;  %v1211_v57 = vadd.f32 %v168_v63, %v126_v54  ;;  %603 = vrot.lane.b32.xlu1 %v587_v24, %s856_s1  ;;  %691 = vrot.lane.b32.xlu0 %v678_v0, %s857_s7 }
  0xdf   :  { %v1218_v61 = vsel %vm78_vm0, %v328_v49, %v330_v62 }
  0xe0   :  { %v465_v4 = vpop.permute.xlu0 %464  ;;  %v467_v5 = vpop.permute.xlu1 %466 }
  0xe1   :  { %v488_v8 = vsub.f32 %v901_v7, %v465_v4  ;;  %v489_v9 = vsub.f32 %v907_v11, %v467_v5  ;;  %697 = vrot.lane.b32.xlu1 %v681_v1, %s857_s7  ;;  %693 = vrot.lane.b32.xlu0 %v680_v6, %s857_s7 }
  0xe3   :  { %v496_v14 = vmul.f32 %v488_v8, %v488_v8  ;;  %v497_v16 = vmul.f32 %v489_v9, %v489_v9 }
  0xe4   :  { %v469_v17 = vpop.permute.xlu0 %468  ;;  %v102_v19 = vpop.permute.xlu1 %101 }
  0xe5   :  { %v513_v18 = vrot.slane %v496_v14, 2  ;;  %v490_v23 = vsub.f32 %v899_v3, %v469_v17  ;;  %v514_v2 = vrot.slane %v497_v16, 2  ;;  %695 = vrot.lane.b32.xlu0 %v682_v20, %s857_s7 }
  0xe7   :  { %v498_v7 = vmul.f32 %v490_v23, %v490_v23  ;;  %v515_v11 = vsel %vm512_vm2, %v513_v18, %v514_v2 }
  0xe8   :  { %v170_v12 = vpop.permute.xlu0 %169  ;;  %v286_v25 = vpop.permute.xlu1 %285 }
  0xe9   :  { %v516_v24 = vrot.slane %v498_v7, 2  ;;  %v191_v26 = vadd.f32 %v170_v12, %v127_v58  ;;  %v305_v27 = vsub.f32 %v924_v21, %v286_v25  ;;  %v121_v25 = vsub.f32 %v924_v21, %v102_v19 }
  0xeb   :  { %v1232_v28 = vsel %vm512_vm2, %v514_v2, %v516_v24  ;;  %v313_v50 = vmul.f32 %v305_v27, %v305_v27 }
  0xec   :  { %v288_v30 = vpop.permute.xlu0 %287  ;;  %v471_v3 = vpop.permute.xlu1 %470 }
  0xed   :  { %v306_v31 = vsub.f32 %v926_v22, %v288_v30  ;;  %v491_v32 = vsub.f32 %v905_v10, %v471_v3  ;;  %v332_v33 = vrot.slane %v313_v50, 1 }
  0xef   :  { %v314_v34 = vmul.f32 %v306_v31, %v306_v31  ;;  %v499_v37 = vmul.f32 %v491_v32, %v491_v32 }
  0xf0   :  { %v172_v38 = vpop.permute.xlu1 %171  ;;  %v104_v43 = vpop.permute.xlu0 %103 }
  0xf1   :  { %v333_v39 = vrot.slane %v314_v34, 1  ;;  %v518_v40 = vrot.slane %v499_v37, 2  ;;  %v192_v41 = vadd.f32 %v172_v38, %v128_v35 }
  0xf3   :  { %v1238_v42 = vsel %vm78_vm0, %v332_v33, %v333_v39  ;;  %v519_v44 = vsel %vm512_vm2, %v516_v24, %v518_v40 }
  0xf4   :  { %v290_v47 = vpop.permute.xlu1 %289  ;;  %v106_v53 = vpop.permute.xlu0 %105 }
  0xf5   :  { %v307_v48 = vsub.f32 %v963_v36, %v290_v47  ;;  %v123_v37 = vsub.f32 %v963_v36, %v106_v53 }
  0xf7   :  { %v1242_v49 = vmul.f32 %v307_v48, %v307_v48  ;;  %v131_v47 = vmul.f32 %v123_v37, %v123_v37 }
  0xf8   :  { %v174_v10 = vpop.permute.xlu1 %173  ;;  %v473_v59 = vpop.permute.xlu0 %472 }
  0xf9   :  { %v335_v51 = vrot.slane %v1242_v49, 1  ;;  %v492_v13 = vsub.f32 %v924_v21, %v473_v59 }
  0xfb   :  { %v336_v54 = vsel %vm78_vm0, %v333_v39, %v335_v51  ;;  %v500_v35 = vmul.f32 %v492_v13, %v492_v13 }
  0xfc   :  { %v292_v56 = vpop.permute.xlu1 %291  ;;  %v1248_v0 = vpop.permute.xlu0 %107 }
 0x100   :  { %v475_v60 = vpop.permute.xlu1 %474  ;;  %v1250_v4 = vpop.permute.xlu0 %476 }
 0x104   :  { %v176_v63 = vpop.permute.xlu1 %175  ;;  %v590_v5 = vpop.permute.xlu0 %589 }
 0x108   :  { %v178_v1 = vpop.permute.xlu1 %177  ;;  %v1256_v8 = vpop.permute.xlu0 %478 }
 0x10c   :  { %v1252_v52 = vpop.permute.xlu1 %591 }
 0x110   :  { %v1254_v6 = vpop.permute.xlu1 %179 }
 0x119   :  { %v424_v9 = vpop.permute.xlu1 %423 }
 0x11b   :  { %v252_v14 = vpop.permute.xlu0 %251 }
 0x11c   :  { %v272_v16 = vadd.f32 %v252_v14, %v192_v41  ;;  %v195_v14 = vadd.f32 %v178_v1, %v131_v47 }
 0x11d   :  { %v246_v17 = vpop.permute.xlu1 %245 }
 0x11e   :  { %v269_v58 = vadd.f32 %v246_v17, %v1209_v55  ;;  %v350_v18 = vadd.f32 %v330_v62, %v272_v16  ;;  %v122_v55 = vsub.f32 %v926_v22, %v104_v43  ;;  %v493_v62 = vsub.f32 %v926_v22, %v475_v60 }
 0x11f   :  { %v248_v20 = vpop.permute.xlu0 %247 }
 0x120   :  { %v347_v23 = vadd.f32 %v1197_v46, %v269_v58  ;;  %v270_v2 = vadd.f32 %v248_v20, %v1211_v57  ;;  %v444_v12 = vadd.f32 %v424_v9, %v350_v18  ;;  %v129_v46 = vmul.f32 %v121_v25, %v121_v25 }
 0x121   :  { %v418_v7 = vpop.permute.xlu1 %417  ;;  %v130_v19 = vmul.f32 %v122_v55, %v122_v55 }
 0x122   :  { %v441_v24 = vadd.f32 %v418_v7, %v347_v23  ;;  %v348_v27 = vadd.f32 %v1205_v15, %v270_v2  ;;  %v538_v29 = vadd.f32 %v518_v40, %v444_v12  ;;  %v308_v15 = vsub.f32 %v975_v45, %v292_v56 }
 0x123   :  { %v250_v30 = vpop.permute.xlu0 %249  ;;  %v194_v48 = vadd.f32 %v176_v63, %v130_v19 }
 0x124   :  { %v535_v50 = vadd.f32 %v515_v11, %v441_v24  ;;  %v271_v3 = vadd.f32 %v250_v30, %v191_v26  ;;  %v1270_v11 = vmul.f32 %v493_v62, %v493_v62  ;;  %v193_v26 = vadd.f32 %v174_v10, %v129_v46 }
 0x125   :  { %v422_v31 = vpop.permute.xlu1 %421  ;;  %v316_v40 = vmul.f32 %v308_v15, %v308_v15 }
 0x126   :  { %v349_v57 = vadd.f32 %v1218_v61, %v271_v3  ;;  %v520_v61 = vrot.slane %v500_v35, 2  ;;  %v521_v41 = vrot.slane %v1270_v11, 2 }
 0x127   :  { %v420_v32 = vpop.permute.xlu0 %419  ;;  %v337_v10 = vrot.slane %v316_v40, 1 }
 0x128   :  { %v443_v33 = vadd.f32 %v422_v31, %v349_v57  ;;  %v442_v34 = vadd.f32 %v420_v32, %v348_v27  ;;  %v522_v53 = vsel %vm512_vm2, %v520_v61, %v521_v41  ;;  %v495_v32 = vsub.f32 %v975_v45, %v1256_v8 }
 0x129   :  { %v338_v18 = vsel %vm78_vm0, %v335_v51, %v337_v10 }
 0x12a   :  { %v536_v21 = vadd.f32 %v1232_v28, %v442_v34  ;;  %v537_v38 = vadd.f32 %v519_v44, %v443_v33  ;;  %v426_v43 = vpop.permute.xlu1 %425  ;;  %v503_v35 = vmul.f32 %v495_v32, %v495_v32 }
 0x12b   :  { %v254_v22 = vpop.permute.xlu0 %253 }
 0x12c   :  { %v273_v39 = vadd.f32 %v254_v22, %v193_v26  ;;  %v614_v7 = vadd.f32 %v1252_v52, %v536_v21  ;;  %v494_v52 = vsub.f32 %v963_v36, %v1250_v4  ;;  %v525_v22 = vrot.slane %v503_v35, 2 }
 0x12e   :  { %v351_v56 = vadd.f32 %v1238_v42, %v273_v39  ;;  %v684_v16 = vpop.permute.xlu1 %683  ;;  %v613_v42 = vadd.f32 %v590_v5, %v535_v50  ;;  %v502_v31 = vmul.f32 %v494_v52, %v494_v52 }
 0x12f   :  { %v256_v59 = vpop.permute.xlu0 %255 }
 0x130   :  { %v274_v60 = vadd.f32 %v256_v59, %v194_v48  ;;  %v445_v9 = vadd.f32 %v426_v43, %v351_v56  ;;  %v707_v2 = vadd.f32 %v684_v16, %v613_v42  ;;  %v523_v4 = vrot.slane %v502_v31, 2 }
 0x132   :  { %v352_v28 = vadd.f32 %v336_v54, %v274_v60  ;;  %v539_v44 = vadd.f32 %v522_v53, %v445_v9  ;;  %v124_v54 = vsub.f32 %v975_v45, %v1248_v0  ;;  %v716_v25 = vsel %vm715_vm3, %v707_v2, 0.0 }
 0x133   :  { %v258_v17 = vpop.permute.xlu0 %257  ;;  %v524_v39 = vsel %vm512_vm2, %v521_v41, %v523_v4  ;;  %v526_v59 = vsel %vm512_vm2, %v523_v4, %v525_v22  ;;  %v858_v2 = vmov 0.0  }
 0x134   :  { %v275_v58 = vadd.f32 %v258_v17, %v195_v14  ;;  %v132_v3 = vmul.f32 %v124_v54, %v124_v54  ;;  %45 = vst.msk [vmem:[#allocation7] sm:$0x1] %vm44_vm5, %v858_v2 }
 0x136   :  { %v353_v20 = vadd.f32 %v338_v18, %v275_v58  ;;  %v196_v0 = vadd.f32 %v1254_v6, %v132_v3 }
 0x137   :  { %v260_v63 = vpop.permute.xlu1 %259  ;;  %v594_v23 = vpop.permute.xlu0 %593 }
 0x138   :  { %v615_v55 = vadd.f32 %v594_v23, %v537_v38 }
 0x13b   :  { %v596_v12 = vpop.permute.xlu1 %595  ;;  %v686_v24 = vpop.permute.xlu0 %685 }
 0x13c   :  { %v708_v1 = vadd.f32 %v686_v24, %v614_v7  ;;  %v616_v5 = vadd.f32 %v596_v12, %v538_v29  ;;  %v276_v29 = vadd.f32 %v260_v63, %v196_v0 }
 0x13e   :  { %v717_v49 = vsel %vm715_vm3, %v708_v1, 0.0  ;;  %v354_v21 = vadd.f32 %v337_v10, %v276_v29 }
 0x13f   :  { %v718_v27 = vadd.f32 %v717_v49, %v716_v25  ;;  %v430_v51 = vpop.permute.xlu1 %429  ;;  %v428_v30 = vpop.permute.xlu0 %427 }
 0x140   :  { %v446_v37 = vadd.f32 %v428_v30, %v352_v28  ;;  %v447_v8 = vadd.f32 %v430_v51, %v353_v20 }
 0x142   :  { %v540_v61 = vadd.f32 %v524_v39, %v446_v37  ;;  %v541_v53 = vadd.f32 %v526_v59, %v447_v8 }
 0x143   :  { %v690_v50 = vpop.permute.xlu1 %689  ;;  %v688_v13 = vpop.permute.xlu0 %687 }
 0x144   :  { %v710_v62 = vadd.f32 %v690_v50, %v616_v5  ;;  %v709_v46 = vadd.f32 %v688_v13, %v615_v55 }
 0x146   :  { %v719_v57 = vsel %vm715_vm3, %v709_v46, 0.0  ;;  %v722_v15 = vsel %vm721_vm4, %v710_v62, 0.0 }
 0x147   :  { %v720_v33 = vadd.f32 %v719_v57, %v718_v27  ;;  %v600_v34 = vpop.permute.xlu1 %599  ;;  %v598_v19 = vpop.permute.xlu0 %597  ;;  %v741_v27 = vld [vmem:[#allocation7] sm:$0x1] }
 0x148   :  { %v617_v6 = vadd.f32 %v598_v19, %v539_v44  ;;  %v618_v47 = vadd.f32 %v600_v34, %v540_v61 }
 0x149   :  { %v723_v36 = vadd.f32 %v722_v15, %v720_v33 }
 0x14b   :  { %v602_v11 = vpop.permute.xlu1 %601  ;;  %v432_v26 = vpop.permute.xlu0 %431 }
 0x14c   :  { %v448_v38 = vadd.f32 %v432_v26, %v354_v21  ;;  %v619_v28 = vadd.f32 %v602_v11, %v541_v53 }
 0x14e   :  { %v542_v48 = vadd.f32 %v525_v22, %v448_v38 }
 0x14f   :  { %v604_v40 = vpop.permute.xlu1 %603  ;;  %v692_v45 = vpop.permute.xlu0 %691 }
 0x150   :  { %v711_v43 = vadd.f32 %v692_v45, %v617_v6  ;;  %v620_v44 = vadd.f32 %v604_v40, %v542_v48 }
 0x152   :  { %v724_v56 = vsel %vm715_vm3, %v711_v43, 0.0 }
 0x153   :  { %v725_v60 = vadd.f32 %v724_v56, %v723_v36  ;;  %v694_v9 = vpop.permute.xlu0 %693  ;;  %v698_v14 = vpop.permute.xlu1 %697 }
 0x154   :  { %v712_v10 = vadd.f32 %v694_v9, %v618_v47  ;;  %v714_v58 = vadd.f32 %v698_v14, %v620_v44 }
 0x156   :  { %v726_v41 = vsel %vm715_vm3, %v712_v10, 0.0  ;;  %v730_v23 = vsel %vm721_vm4, %v714_v58, 0.0 }
 0x157   :  { %v727_v16 = vadd.f32 %v726_v41, %v725_v60  ;;  %v696_v17 = vpop.permute.xlu0 %695 }
 0x158   :  { %v713_v18 = vadd.f32 %v696_v17, %v619_v28 }
 0x15a   :  { %v728_v20 = vsel %vm715_vm3, %v713_v18, 0.0 }
 0x15b   :  { %v729_v63 = vadd.f32 %v728_v20, %v727_v16 }
 0x15d   :  { %v731_v42 = vadd.f32 %v730_v23, %v729_v63 }
 0x15f   :  { %732 = vadd.xlane.f32.xlu0 %v731_v42 }
 0x1ec   :  { %v733_v7 = vpop.xlane.xlu0 %732 }
 0x1ed   :  { %v734_v12 = vrot.slane %v733_v7, 4 }
 0x1ef   :  { %v735_v24 = vadd.f32 %v734_v12, %v733_v7 }
 0x1f1   :  { %v736_v1 = vrot.slane %v735_v24, 2 }
 0x1f3   :  { %v737_v54 = vadd.f32 %v736_v1, %v735_v24 }
 0x1f5   :  { %v738_v25 = vrot.slane %v737_v54, 1 }
 0x1f7   :  { %v739_v49 = vadd.f32 %v738_v25, %v737_v54 }
 0x1f9   :  { %768 = vpush %v739_v49 }
 0x22a   :  { %s769_s8 = spop %768 }
 0x22b   :  { %v742_v51 = vstv %s769_s8 }
 0x22c   :  { %v743_v30 = vadd.f32 %v742_v51, %v741_v27 }
 0x22e   :  { %745 = vst.msk [vmem:[#allocation7] sm:$0x1] %vm44_vm5, %v743_v30 }
 0x235   :  { %v749_v3 = vld [vmem:[#allocation7] sm:$0x1] }
 0x236   :  { %v750_v55 = vmul.f32 6.9444446e-05, %v749_v3 }
 0x238   :  { %751 = vst.msk [vmem:[#allocation7] sm:$0x1] %vm44_vm5, %v750_v55 }
 0x239   :  { %834 = shalt.err (!%p831_p6)
}
 0x23a   :  { %s835_s15 = scalar_lea.hbm %s1315_s2, 16 }
 0x23b   :  { %p836_p7 = scmp.ne.s32.totalorder %s1315_s2, %s835_s15  ;;  %p839_p8 = scmp.lt.u32.totalorder %s835_s15, %s1315_s2 }
 0x23d   :  { %p841_p9 = pnand %p839_p8, %p836_p7 }
 0x23f   :  { %844 = shalt.err (!%p841_p9)
}
 0x240   :  { %761 = dma.vmem_to_hbm [thread:$0]  %s759_s10, 16, %s1315_s2, [#allocation4]  }
 0x241   :  { %849 = dma.done.wait [#allocation4], 16  }
 0x242   :  { %850 = vsyncadd [#allocation4], 4294967280 }
 0x243   :  { %765 = vsyncpa [#allocation3], 1 }
 0x244   :  { %766 = vsyncpa [#allocation6], 1 }
 0x245   :  { %767 = vsyncpa [#allocation4], 1 }

</bundles_post_ra>
